<compile_context>
chip_gen: v6e
topology: v6e:2x2x1
jax: 0.10.0
libtpu: 0.0.40
codegen_flags: <defaults>
</compile_context>

<pallas_src>
import functools
import math

import jax
import jax.numpy as jnp
from jax.experimental import pallas as pl
from jax.experimental.pallas import tpu as pltpu


# ---------------------------------------------------------------------------
# Hardware introspection & tile selection
# ---------------------------------------------------------------------------

_DEFAULT_VMEM_BYTES = 64 * 1024 * 1024  # conservative fallback (= v7x physical)


def _tpu_limits():
    """Return (physical VMEM bytes, minimum desirable number of grid steps)."""
    vmem = None
    try:
        info = pltpu.get_tpu_info()
        vmem = int(getattr(info, "vmem_capacity_bytes"))
    except Exception:
        vmem = None
    if not vmem or vmem <= 0:
        vmem = _DEFAULT_VMEM_BYTES
    vmem = max(vmem, 16 * 1024 * 1024)

    kind = ""
    try:
        kind = jax.devices()[0].device_kind.lower()
    except Exception:
        pass
    # v7x has 2 TensorCores per chip: want >= 2 pipelined steps per core.
    min_steps = 4 if "v7" in kind else 2
    return vmem, min_steps


def _divisors_desc(n):
    return [d for d in range(n, 0, -1) if n % d == 0]


def _valid_tiles(n, multiple):
    """Divisors of n that are layout-friendly (multiple of `multiple`) or n itself."""
    return [d for d in _divisors_desc(n) if d % multiple == 0 or d == n]


def _choose_blocks_full(B, Q, L, D, in_bytes, out_bytes, attn_bytes,
                        mask_bytes, budget, min_steps):
    """Tile sizes (Bt, Qt) for the attn-returning (whole-L) kernel."""
    q_tiles = _valid_tiles(Q, 8)
    b_tiles = _divisors_desc(B)

    def vmem_cost(bt, qt):
        # double-buffered pipelined inputs / outputs + in-body f32 temporaries
        inp = 2 * bt * (qt * D + 2 * L * D) * in_bytes + 2 * bt * qt * L * mask_bytes
        out = 2 * bt * (qt * D * out_bytes + qt * L * attn_bytes)
        tmp = 3 * bt * qt * L * 4 + bt * qt * D * 4
        return inp + out + tmp

    fits = [(bt * qt, qt, bt) for qt in q_tiles for bt in b_tiles
            if vmem_cost(bt, qt) <= budget]
    if not fits:
        # Nothing fits the budget: take the smallest legal tile.  TODO(synk):
        # fall back to a two-pass / streamed-attn kernel for extreme L.
        return 1, q_tiles[-1]
    fits.sort(reverse=True)  # biggest tile first; prefer larger Qt at equal size
    for _, qt, bt in fits:
        if (B // bt) * (Q // qt) >= min_steps:
            return bt, qt
    _, qt, bt = fits[-1]     # problem too small for min_steps: most steps possible
    return bt, qt


def _choose_blocks_flash(B, Q, L, D, in_bytes, out_bytes, mask_bytes,
                         budget, min_steps):
    """Tile sizes (Bt, Qt, Lt) for the flash-style (online-softmax) kernel."""
    q_tiles = _valid_tiles(Q, 8)
    l_tiles = _valid_tiles(L, 128)
    b_tiles = _divisors_desc(B)

    def vmem_cost(bt, qt, lt):
        inp = 2 * bt * (qt * D + 2 * lt * D) * in_bytes + 2 * bt * qt * lt * mask_bytes
        out = 2 * bt * qt * D * out_bytes
        scratch = bt * qt * (D + 2) * 4          # m, l, acc accumulators (f32)
        tmp = 2 * bt * qt * lt * 4
        return inp + out + scratch + tmp

    fits = [(bt * qt * lt, qt * lt, lt, qt, bt)
            for qt in q_tiles for lt in l_tiles for bt in b_tiles
            if vmem_cost(bt, qt, lt) <= budget]
    if not fits:
        return 1, q_tiles[-1], l_tiles[-1]
    fits.sort(reverse=True)  # biggest tile first; prefer bigger MXU dims (qt, lt)
    for _, _, lt, qt, bt in fits:
        if (B // bt) * (Q // qt) * (L // lt) >= min_steps:
            return bt, qt, lt
    _, _, lt, qt, bt = fits[-1]
    return bt, qt, lt


# ---------------------------------------------------------------------------
# Kernel bodies
# ---------------------------------------------------------------------------

def _sdpa_full_kernel(*refs, scale, has_mask, compute_dtype, approx):
    """Whole-L kernel: grid = (B/Bt, Q/Qt). Outputs context AND attn weights."""
    q_ref, k_ref, v_ref = refs[:3]
    if has_mask:
        mask_ref = refs[3]
        ctx_ref, attn_ref = refs[4:6]
    else:
        mask_ref = None
        ctx_ref, attn_ref = refs[3:5]

    # Fold 1/sqrt(D) into q: a (Qt,D)-sized multiply instead of (Qt,L)-sized.
    q = q_ref[...].astype(compute_dtype) * jnp.asarray(scale, dtype=compute_dtype)
    k = k_ref[...].astype(compute_dtype)
    v = v_ref[...].astype(compute_dtype)

    # Batched Q @ K^T on the MXU, f32 accumulation.
    score = jnp.einsum("bqd,bkd->bqk", q, k,
                       preferred_element_type=jnp.float32)         # (Bt,Qt,L)
    if mask_ref is not None:
        score = jnp.where(mask_ref[...] != 0, -jnp.inf, score)

    # Max-stabilised softmax (f32).  Reciprocal of the small (Bt,Qt,1) sum +
    # broadcast multiply instead of a full-size divide.
    m = jnp.max(score, axis=-1, keepdims=True)
    p = jnp.exp(score - m)
    inv = pl.reciprocal(jnp.sum(p, axis=-1, keepdims=True), approx=approx)
    attn = p * inv                                                  # (Bt,Qt,L)

    ctx = jnp.einsum("bqk,bkd->bqd", attn.astype(compute_dtype), v,
                     preferred_element_type=jnp.float32)            # (Bt,Qt,D)

    ctx_ref[...] = ctx.astype(ctx_ref.dtype)
    attn_ref[...] = attn.astype(attn_ref.dtype)


def _sdpa_flash_kernel(*refs, scale, has_mask, compute_dtype, approx):
    """Flash-style kernel: grid = (B/Bt, Q/Qt, L/Lt); online softmax, ctx only."""
    q_ref, k_ref, v_ref = refs[:3]
    if has_mask:
        mask_ref, ctx_ref, m_ref, l_ref, acc_ref = refs[3:8]
    else:
        mask_ref = None
        ctx_ref, m_ref, l_ref, acc_ref = refs[3:7]

    kv = pl.program_id(2)

    @pl.when(kv == 0)
    def _():
        m_ref[...] = jnp.full_like(m_ref, -jnp.inf)
        l_ref[...] = jnp.zeros_like(l_ref)
        acc_ref[...] = jnp.zeros_like(acc_ref)

    q = q_ref[...].astype(compute_dtype) * jnp.asarray(scale, dtype=compute_dtype)
    k = k_ref[...].astype(compute_dtype)
    v = v_ref[...].astype(compute_dtype)

    s = jnp.einsum("bqd,bkd->bqk", q, k,
                   preferred_element_type=jnp.float32)              # (Bt,Qt,Lt)
    if mask_ref is not None:
        s = jnp.where(mask_ref[...] != 0, -jnp.inf, s)

    m_prev = m_ref[...]
    m_new = jnp.maximum(m_prev, jnp.max(s, axis=-1, keepdims=True))
    # Guard rows whose every key seen so far is masked (m_new == -inf) so that
    # (-inf) - (-inf) does not poison later, unmasked k blocks with NaN.
    m_safe = jnp.where(m_new == -jnp.inf, 0.0, m_new)
    alpha = jnp.exp(m_prev - m_safe)
    p = jnp.exp(s - m_safe)

    l_ref[...] = alpha * l_ref[...] + jnp.sum(p, axis=-1, keepdims=True)
    acc_ref[...] = alpha * acc_ref[...] + jnp.einsum(
        "bqk,bkd->bqd", p.astype(compute_dtype), v,
        preferred_element_type=jnp.float32)
    m_ref[...] = m_new

    @pl.when(kv == pl.num_programs(2) - 1)
    def _():
        inv = pl.reciprocal(l_ref[...], approx=approx)
        # Fully-masked rows: l == 0 -> inf * 0 = NaN, matching torch semantics.
        ctx_ref[...] = (acc_ref[...] * inv).astype(ctx_ref.dtype)


# ---------------------------------------------------------------------------
# Public wrapper
# ---------------------------------------------------------------------------

def scaled_dot_product_attention(query, key, value, mask=None, *,
                                 return_attn=True,
                                 attn_dtype=None,
                                 compute_dtype=None,
                                 approx_reciprocal=False,
                                 block_b=None, block_q=None, block_k=None,
                                 vmem_fraction=0.5):
    """query: (B, q_len, D); key/value: (B, k_len, D).

    mask (optional): any tensor with exactly B*q_len*k_len elements (same
    contract as torch's mask.view(score.size())); nonzero entries are filled
    with -inf before the softmax.

    return_attn=False selects the flash-style (online-softmax, k-tiled) kernel
    and returns (context, None) — use it for long sequences / when the
    attention matrix is not needed.  compute_dtype=jnp.bfloat16 feeds the MXU
    bf16 inputs (full rate on v6e/v7x) while keeping f32 accumulation.
    approx_reciprocal=True routes the softmax normalisation reciprocal to the
    EUP (slightly lower precision).
    """
    B, Q, D = query.shape
    Bk, L, Dk = key.shape
    assert key.shape == value.shape and Bk == B and Dk == D
    scale = 1.0 / math.sqrt(D)

    compute_dtype = jnp.dtype(compute_dtype if compute_dtype is not None
                              else query.dtype)
    attn_dtype = jnp.dtype(attn_dtype if attn_dtype is not None
                           else query.dtype)

    has_mask = mask is not None
    if has_mask:
        mask_arr = (jnp.reshape(mask, (B, Q, L)) != 0).astype(jnp.int8)

    in_bytes = jnp.dtype(query.dtype).itemsize
    out_bytes = in_bytes
    attn_bytes = attn_dtype.itemsize
    mask_bytes = 1 if has_mask else 0

    vmem_bytes, min_steps = _tpu_limits()
    budget = int(vmem_fraction * vmem_bytes)
    vmem_limit = int(0.9 * vmem_bytes)

    if return_attn:
        # -------- whole-L path (needed to return normalised attn weights) ----
        bt, qt = _choose_blocks_full(B, Q, L, D, in_bytes, out_bytes, attn_bytes,
                                     mask_bytes, budget, min_steps)
        if block_b is not None:
            bt = block_b
        if block_q is not None:
            qt = block_q
        assert B % bt == 0 and Q % qt == 0

        kernel = functools.partial(
            _sdpa_full_kernel, scale=scale, has_mask=has_mask,
            compute_dtype=compute_dtype, approx=approx_reciprocal)

        in_specs = [
            pl.BlockSpec((bt, qt, D), lambda b, q: (b, q, 0)),   # query
            pl.BlockSpec((bt, L, D), lambda b, q: (b, 0, 0)),    # key
            pl.BlockSpec((bt, L, D), lambda b, q: (b, 0, 0)),    # value
        ]
        args = [query, key, value]
        if has_mask:
            in_specs.append(pl.BlockSpec((bt, qt, L), lambda b, q: (b, q, 0)))
            args.append(mask_arr)

        ctx, attn = pl.pallas_call(
            kernel,
            out_shape=(
                jax.ShapeDtypeStruct((B, Q, D), query.dtype),    # context
                jax.ShapeDtypeStruct((B, Q, L), attn_dtype),     # attn weights
            ),
            grid_spec=pltpu.PrefetchScalarGridSpec(
                num_scalar_prefetch=0,
                grid=(B // bt, Q // qt),
                in_specs=in_specs,
                out_specs=[
                    pl.BlockSpec((bt, qt, D), lambda b, q: (b, q, 0)),
                    pl.BlockSpec((bt, qt, L), lambda b, q: (b, q, 0)),
                ],
            ),
            compiler_params=pltpu.CompilerParams(
                dimension_semantics=("parallel", "parallel"),
                vmem_limit_bytes=vmem_limit),
        )(*args)
        return ctx, attn

    # -------- flash path: k tiled on a trailing "arbitrary" axis -------------
    bt, qt, lt = _choose_blocks_flash(B, Q, L, D, in_bytes, out_bytes,
                                      mask_bytes, budget, min_steps)
    if block_b is not None:
        bt = block_b
    if block_q is not None:
        qt = block_q
    if block_k is not None:
        lt = block_k
    assert B % bt == 0 and Q % qt == 0 and L % lt == 0

    kernel = functools.partial(
        _sdpa_flash_kernel, scale=scale, has_mask=has_mask,
        compute_dtype=compute_dtype, approx=approx_reciprocal)

    in_specs = [
        pl.BlockSpec((bt, qt, D), lambda b, q, k: (b, q, 0)),    # query
        pl.BlockSpec((bt, lt, D), lambda b, q, k: (b, k, 0)),    # key
        pl.BlockSpec((bt, lt, D), lambda b, q, k: (b, k, 0)),    # value
    ]
    args = [query, key, value]
    if has_mask:
        in_specs.append(pl.BlockSpec((bt, qt, lt), lambda b, q, k: (b, q, k)))
        args.append(mask_arr)

    ctx = pl.pallas_call(
        kernel,
        out_shape=jax.ShapeDtypeStruct((B, Q, D), query.dtype),
        grid_spec=pltpu.PrefetchScalarGridSpec(
            num_scalar_prefetch=0,
            grid=(B // bt, Q // qt, L // lt),
            in_specs=in_specs,
            out_specs=pl.BlockSpec((bt, qt, D), lambda b, q, k: (b, q, 0)),
            scratch_shapes=[
                pltpu.VMEM((bt, qt, 1), jnp.float32),            # running max m
                pltpu.VMEM((bt, qt, 1), jnp.float32),            # running sum l
                pltpu.VMEM((bt, qt, D), jnp.float32),            # unnormalised acc
            ],
        ),
        compiler_params=pltpu.CompilerParams(
            dimension_semantics=("parallel", "parallel", "arbitrary"),
            vmem_limit_bytes=vmem_limit),
    )(*args)
    return ctx, None


def scaled_dot_product_attention_ref(query, key, value, mask=None):
    """Pure-JAX reference mirroring the PyTorch forward."""
    D = query.shape[-1]
    score = jnp.einsum("bqd,bkd->bqk", query, key) / math.sqrt(D)
    if mask is not None:
        score = jnp.where(jnp.reshape(mask, score.shape), -jnp.inf, score)
    attn = jax.nn.softmax(score, axis=-1)
    context = jnp.einsum("bqk,bkd->bqd", attn, value)
    return context, attn


if __name__ == "__main__":
    B, Q, L, D = 2, 4, 8, 32
    rng = jax.random.PRNGKey(0)
    kq, kk, kv = jax.random.split(rng, 3)

    query = jax.random.normal(kq, (B, Q, D), dtype=jnp.float32)
    key = jax.random.normal(kk, (B, L, D), dtype=jnp.float32)
    value = jax.random.normal(kv, (B, L, D), dtype=jnp.float32)

    ctx_ref, attn_ref = scaled_dot_product_attention_ref(query, key, value)
    mask = jnp.zeros((B, Q, L), dtype=bool).at[:, :, L - 2:].set(True)
    ctx_mr, attn_mr = scaled_dot_product_attention_ref(query, key, value, mask)

    # 1) Unmasked, attn-returning path.
    ctx, attn = scaled_dot_product_attention(query, key, value)
    jax.block_until_ready((ctx, attn))
    assert ctx.shape == (B, Q, D) and attn.shape == (B, Q, L)
    assert jnp.allclose(ctx, ctx_ref, atol=1e-5, rtol=1e-5)
    assert jnp.allclose(attn, attn_ref, atol=1e-5, rtol=1e-5)

    # 2) Masked path (mask out the last two key positions everywhere).
    ctx_m, attn_m = scaled_dot_product_attention(query, key, value, mask)
    jax.block_until_ready((ctx_m, attn_m))
    assert jnp.allclose(ctx_m, ctx_mr, atol=1e-5, rtol=1e-5)
    assert jnp.allclose(attn_m, attn_mr, atol=1e-5, rtol=1e-5)

    # 3) Flash (online-softmax, context-only) path, unmasked + masked.
    ctx_f, no_attn = scaled_dot_product_attention(query, key, value,
                                                  return_attn=False)
    jax.block_until_ready(ctx_f)
    assert no_attn is None
    assert jnp.allclose(ctx_f, ctx_ref, atol=1e-5, rtol=1e-5)

    ctx_fm, _ = scaled_dot_product_attention(query, key, value, mask,
                                             return_attn=False)
    jax.block_until_ready(ctx_fm)
    assert jnp.allclose(ctx_fm, ctx_mr, atol=1e-5, rtol=1e-5)

    # 4) bf16 MXU-input fast path (v6e/v7x) — looser tolerance vs f32 reference.
    ctx_bf, attn_bf = scaled_dot_product_attention(query, key, value,
                                                   compute_dtype=jnp.bfloat16)
    jax.block_until_ready((ctx_bf, attn_bf))
    assert jnp.allclose(ctx_bf, ctx_ref, atol=5e-2, rtol=5e-2)

    print("KERNEL_OK")
</pallas_src>

<mosaic_0001>
module attributes {stable_mosaic.version = 11 : i64} {
  func.func @_sdpa_full_kernel(%arg0: i32, %arg1: i32, %arg2: memref<1x4x32xf32, #tpu.memory_space<vmem>>, %arg3: memref<1x8x32xf32, #tpu.memory_space<vmem>>, %arg4: memref<1x8x32xf32, #tpu.memory_space<vmem>>, %arg5: memref<1x4x32xf32, #tpu.memory_space<vmem>>, %arg6: memref<1x4x8xf32, #tpu.memory_space<vmem>>) attributes {dimension_semantics = [#tpu.dimension_semantics<parallel>, #tpu.dimension_semantics<parallel>], iteration_bounds = array<i64: 2, 1>, scalar_prefetch = 0 : i64, scratch_operands = 0 : i64, tpu.core_type = #tpu.core_type<tc>, window_params = [{transform_indices = @transform_0, window_bounds = array<i64: 1, 4, 32>}, {transform_indices = @transform_1, window_bounds = array<i64: 1, 8, 32>}, {transform_indices = @transform_2, window_bounds = array<i64: 1, 8, 32>}, {transform_indices = @transform_3, window_bounds = array<i64: 1, 4, 32>}, {transform_indices = @transform_4, window_bounds = array<i64: 1, 4, 8>}]} {
    %c0 = arith.constant 0 : index
    %c0_0 = arith.constant 0 : index
    %c0_1 = arith.constant 0 : index
    %0 = vector.load %arg2[%c0, %c0_0, %c0_1] : memref<1x4x32xf32, #tpu.memory_space<vmem>>, vector<1x4x32xf32>
    %cst = arith.constant 0.176776692 : f32
    %1 = vector.broadcast %cst : f32 to vector<1x4x32xf32>
    %2 = arith.mulf %0, %1 : vector<1x4x32xf32>
    %c0_2 = arith.constant 0 : index
    %c0_3 = arith.constant 0 : index
    %c0_4 = arith.constant 0 : index
    %3 = vector.load %arg3[%c0_2, %c0_3, %c0_4] : memref<1x8x32xf32, #tpu.memory_space<vmem>>, vector<1x8x32xf32>
    %c0_5 = arith.constant 0 : index
    %c0_6 = arith.constant 0 : index
    %c0_7 = arith.constant 0 : index
    %4 = vector.load %arg4[%c0_5, %c0_6, %c0_7] : memref<1x8x32xf32, #tpu.memory_space<vmem>>, vector<1x8x32xf32>
    "tpu.trace_start"() <{level = 10 : i32, message = "bqd,bkd->bqk"}> : () -> ()
    %cst_8 = arith.constant dense<0.000000e+00> : vector<1x4x8xf32>
    %5 = tpu.matmul %2, %3, %cst_8 {dimension_numbers = #tpu.dot_dimension_numbers<[2], [2], [1], [1], [0, 0, 0, 1, 1, 1], [0], [0]>} : vector<1x4x32xf32>, vector<1x8x32xf32>, vector<1x4x8xf32> -> vector<1x4x8xf32>
    "tpu.trace_stop"() : () -> ()
    %cst_9 = arith.constant dense<0xFF800000> : vector<1x4xf32>
    %6 = vector.multi_reduction <maximumf>, %5, %cst_9 [2] : vector<1x4x8xf32> to vector<1x4xf32>
    %7 = vector.shape_cast %6 : vector<1x4xf32> to vector<1x4x1xf32>
    %8 = vector.broadcast %7 : vector<1x4x1xf32> to vector<1x4x8xf32>
    %9 = arith.subf %5, %8 : vector<1x4x8xf32>
    %10 = math.exp %9 : vector<1x4x8xf32>
    %cst_10 = arith.constant dense<0.000000e+00> : vector<1x4xf32>
    %11 = vector.multi_reduction <add>, %10, %cst_10 [2] : vector<1x4x8xf32> to vector<1x4xf32>
    %12 = vector.shape_cast %11 : vector<1x4xf32> to vector<1x4x1xf32>
    %13 = tpu.reciprocal %12 : vector<1x4x1xf32> -> vector<1x4x1xf32>
    %14 = vector.broadcast %13 : vector<1x4x1xf32> to vector<1x4x8xf32>
    %15 = arith.mulf %10, %14 : vector<1x4x8xf32>
    "tpu.trace_start"() <{level = 10 : i32, message = "bqk,bkd->bqd"}> : () -> ()
    %cst_11 = arith.constant dense<0.000000e+00> : vector<1x4x32xf32>
    %16 = tpu.matmul %15, %4, %cst_11 {dimension_numbers = #tpu.dot_dimension_numbers<[2], [1], [1], [2], [0, 0, 0, 1, 1, 2], [0], [0]>} : vector<1x4x8xf32>, vector<1x8x32xf32>, vector<1x4x32xf32> -> vector<1x4x32xf32>
    "tpu.trace_stop"() : () -> ()
    %c0_12 = arith.constant 0 : index
    %c0_13 = arith.constant 0 : index
    %c0_14 = arith.constant 0 : index
    %17 = vector.load %arg5[%c0_12, %c0_13, %c0_14] : memref<1x4x32xf32, #tpu.memory_space<vmem>>, vector<1x4x32xf32>
    tpu.vector_store %arg5[%c0_12, %c0_13, %c0_14], %16 {strides = array<i32>} : memref<1x4x32xf32, #tpu.memory_space<vmem>>, vector<1x4x32xf32>,
    %c0_15 = arith.constant 0 : index
    %c0_16 = arith.constant 0 : index
    %c0_17 = arith.constant 0 : index
    %18 = vector.load %arg6[%c0_15, %c0_16, %c0_17] : memref<1x4x8xf32, #tpu.memory_space<vmem>>, vector<1x4x8xf32>
    tpu.vector_store %arg6[%c0_15, %c0_16, %c0_17], %15 {strides = array<i32>} : memref<1x4x8xf32, #tpu.memory_space<vmem>>, vector<1x4x8xf32>,
    return
  }
  func.func @transform_0(%arg0: i32, %arg1: i32) -> (i32, i32, i32) {
    %c0_i32 = arith.constant 0 : i32
    %c0_i32_0 = arith.constant 0 : i32
    return %arg0, %arg1, %c0_i32 : i32, i32, i32
  }
  func.func @transform_1(%arg0: i32, %arg1: i32) -> (i32, i32, i32) {
    %c0_i32 = arith.constant 0 : i32
    %c0_i32_0 = arith.constant 0 : i32
    %c0_i32_1 = arith.constant 0 : i32
    return %arg0, %c0_i32, %c0_i32_0 : i32, i32, i32
  }
  func.func @transform_2(%arg0: i32, %arg1: i32) -> (i32, i32, i32) {
    %c0_i32 = arith.constant 0 : i32
    %c0_i32_0 = arith.constant 0 : i32
    %c0_i32_1 = arith.constant 0 : i32
    return %arg0, %c0_i32, %c0_i32_0 : i32, i32, i32
  }
  func.func @transform_3(%arg0: i32, %arg1: i32) -> (i32, i32, i32) {
    %c0_i32 = arith.constant 0 : i32
    %c0_i32_0 = arith.constant 0 : i32
    return %arg0, %arg1, %c0_i32 : i32, i32, i32
  }
  func.func @transform_4(%arg0: i32, %arg1: i32) -> (i32, i32, i32) {
    %c0_i32 = arith.constant 0 : i32
    %c0_i32_0 = arith.constant 0 : i32
    return %arg0, %arg1, %c0_i32 : i32, i32, i32
  }
}

</mosaic_0001>

<bundles_post_ra>
// kernel: tpu_custom_call.1
= control target key start
LH: loop header
LB: loop body
LE: loop exit
PB: predicated region body
PF: predicated region fallthrough
CT: control target
= control target key end

     0   :  { %s1257_s0 = inlined_call_operand.hbm [shape: f32[2,4,32], index: 0, kind: input, shape index: {}]   ;;  %s1258_s1 = inlined_call_operand.hbm [shape: f32[2,8,32], index: 1, kind: input, shape index: {}]   ;;  %s1259_s2 = inlined_call_operand.hbm [shape: f32[2,8,32], index: 2, kind: input, shape index: {}]   ;;  %s1260_s3 = inlined_call_operand.hbm [shape: f32[2,4,32], index: 3, kind: output, shape index: {0}]   ;;  %s1261_s4 = inlined_call_operand.hbm [shape: f32[2,4,8], index: 4, kind: output, shape index: {1}]  }
   0x1   :  { %1264 = sst [smem:[#allocation18_spill]] %s1258_s1 }
   0x2   :  { %1265 = sst [smem:[#allocation19_spill]] %s1259_s2 }
   0x3   :  { %10 = vsyncpa [#allocation3], 0 }
   0x4   :  { %12 = vsyncpa [#allocation3 + $0x1], 0 }
   0x5   :  { %13 = vsyncpa [#allocation6], 0 }
   0x6   :  { %15 = vsyncpa [#allocation6 + $0x1], 0 }
   0x7   :  { %16 = vsyncpa [#allocation4], 0 }
   0x8   :  { %18 = vsyncpa [#allocation4 + $0x1], 0 }
   0x9   :  { %19 = vsyncpa [#allocation10], 0 }
   0xa   :  { %21 = vsyncpa [#allocation10 + $0x1], 0  ;;  %s1028_s15 = smov 0   ;;  %s1030_s16 = smov 0  }
   0xb   :  { %s1032_s17 = smov 0   ;;  %s1034_s18 = smov 0  }
   0xc   :  { %s1036_s19 = smov 0   ;;  %s1038_s20 = smov 0  }
   0xd LB: > { %1266 = sst [smem:[#allocation15_spill]] %s990_s19  ;;  %s1059_s21 = sadd.s32 4294967295, %s994_s20   ;;  %s994_s20 = sphi %s1038_s20, %s27_s20   ;;  %s990_s19 = sphi %s1036_s19, %s1280_s19   ;;  %s986_s18 = sphi %s1034_s18, %s1279_s18   ;;  %s982_s17 = sphi %s1032_s17, %s1283_s17   ;;  %s978_s16 = sphi %s1030_s16, %s1282_s16   ;;  %s974_s15 = sphi %s1028_s15, %s1281_s15  }
   0xe   : > { %s675_s22 = sadd.s32 4294967294, %s994_s20   ;;  %s39_s23 = sadd.s32 1, %s990_s19 }
   0xf   : > { %s48_s24 = sadd.s32 1, %s982_s17  ;;  %p41_p0 = scmp.ge.s32.totalorder %s39_s23, 2 }
  0x10   : > { %p55_p1 = scmp.ne.s32.totalorder %s982_s17, %s978_s16  ;;  %p56_p2 = scmp.eq.s32.totalorder %s994_s20, 0 }
  0x11   : > { %p61_p3 = scmp.ne.s32.totalorder %s978_s16, %s974_s15  ;;  %s1285_s23 = smov (%p41_p0, %s39_s23), 0 }
  0x12   : > { %1267 = sst [smem:[#allocation16_spill]] %s1285_s23  ;;  %p1071_p4 = por %p56_p2, %p55_p1 }
  0x13   : > { %p62_p5 = scmp.eq.s32.totalorder %s1059_s21, 0  ;;  %s43_s26 = ssub.s32 %s990_s19, %s1285_s23 }
  0x14   : > { %p139_p6 = scmp.eq.s32.totalorder %s1059_s21, 1  ;;  %p46_p7 = scmp.eq.s32.totalorder %s43_s26, 0 }
  0x15   : > { %p1079_p8 = por %p62_p5, %p61_p3  ;;  %p145_p10 = scmp.eq.s32.totalorder %s675_s22, 1 }
  0x16   : > { %p1083_p9 = por %p139_p6, %p55_p1  ;;  %p740_p13 = scmp.lt.s32.totalorder %s994_s20, 2 }
  0x17   : > { %s1088_s29 = scalar_select %p46_p7, %s982_s17, %s48_s24  }
  0x18   : > { %p1090_p11 = por %p145_p10, %p61_p3  ;;  %s1097_s5 = sand.u32 1, %s982_s17  }
  0x19   : > { %1271 = sst [smem:[#allocation17_spill]] %s1088_s29  ;;  %s212_s6 = sand.u32 1, %s994_s20  }
  0x1a   : > { %s680_s7 = sshll.u32 %s1097_s5, 3  ;;  %p1103_p0 = pnand %p740_p13, %p1071_p4 }
  0x1b   : > { %s681_s9 = sshll.u32 %s990_s19, 7  ;;  %s1274_s1 = sld [smem:[#allocation18_spill]] }
  0x1c   : > { %s216_s13 = scalar_lea.vmem [#allocation5], %s680_s7  ;;  %s1275_s2 = sld [smem:[#allocation19_spill]] }
  0x1d   : > { %s223_s14 = sshll.u32 %s216_s13, 4  ;;  %s1118_s25 = scalar_lea.sflag [#allocation6], %s212_s6  ;;  %s224_s14 = int_to_ptr.vmem [resolvable:$true] %s223_s14 }
  0x1e   : > { %p798_p1 = pneg %p1103_p0  ;;  %s809_s23 = scalar_lea.vmem %s224_s14, 128 }
  0x1f   : > { %p810_p2 = scmp.ne.s32.totalorder %s224_s14, %s809_s23  ;;  %s996_s10 = smov [#allocation5]  }
  0x20   : > { %s814_s11 = sshll.u32 %s996_s10, 4  ;;  %s815_s11 = int_to_ptr.vmem [resolvable:$false] %s814_s11 }
  0x21   : > { %s221_s12 = scalar_lea.hbm %s1274_s1, %s681_s9  ;;  %p812_p3 = pnand %p810_p2, %p798_p1 }
  0x22   : > { %s1116_s26 = scalar_lea.hbm %s1275_s2, %s681_s9  ;;  %s816_s13 = scalar_lea.vmem %s815_s11, 256 }
  0x23   : > { %p813_p4 = pneg %p812_p3  ;;  %p817_p5 = scmp.lt.s32.totalorder %s224_s14, %s815_s11 }
  0x24   : > { %p818_p6 = scmp.lt.s32.totalorder %s816_s13, %s809_s23 }
  0x26   : > { %p819_p7 = por %p818_p6, %p817_p5 }
  0x28   : > { %p820_p10 = pnand %p819_p7, %p813_p4 }
  0x2a   : > { %823 = shalt.err (!%p820_p10)
}
  0x2b   : > { %729 = dma.hbm_to_vmem [thread:$0]  (!%p1103_p0), %s221_s12, 128, %s224_s14, %s1118_s25  }
  0x2c   : > { %p684_p13 = scmp.ge.s32.totalorder %s994_s20, 1  ;;  %p246_p2 = scmp.lt.s32.totalorder %s994_s20, 3 }
  0x2d   : > { %s678_s23 = sshll.u32 %s1097_s5, 2  ;;  %s679_s9 = sshll.u32 %s990_s19, 6 }
  0x2e   : > { %p1130_p3 = pnand %p684_p13, %p246_p2  ;;  %s203_s10 = scalar_lea.hbm %s1257_s0, %s679_s9 }
  0x2f   : > { %s197_s11 = scalar_lea.vmem [#allocation2], %s678_s23  ;;  %s234_s1 = scalar_lea.vmem [#allocation7], %s680_s7 }
  0x30   : > { %s205_s13 = sshll.u32 %s197_s11, 4  ;;  %s241_s2 = sshll.u32 %s234_s1, 4  ;;  %s206_s13 = int_to_ptr.vmem [resolvable:$true] %s205_s13  ;;  %s1141_s2 = int_to_ptr.vmem [resolvable:$true] %s241_s2 }
  0x31   : > { %s194_s12 = scalar_lea.sflag [#allocation3], %s1097_s5  ;;  %s837_s14 = scalar_lea.vmem %s206_s13, 64 }
  0x32   : > { %p838_p4 = scmp.ne.s32.totalorder %s206_s13, %s837_s14  ;;  %s997_s19 = smov [#allocation2]  }
  0x33   : > { %s842_s29 = sshll.u32 %s997_s19, 4  ;;  %s843_s29 = int_to_ptr.vmem [resolvable:$false] %s842_s29 }
  0x34   : > { %p840_p5 = pnand %p838_p4, %p798_p1  ;;  %s844_s22 = scalar_lea.vmem %s843_s29, 128 }
  0x35   : > { %p845_p7 = scmp.lt.s32.totalorder %s206_s13, %s843_s29  ;;  %p846_p10 = scmp.lt.s32.totalorder %s844_s22, %s837_s14 }
  0x36   : > { %p841_p6 = pneg %p840_p5 }
  0x37   : > { %p847_p13 = por %p846_p10, %p845_p7 }
  0x39   : > { %p848_p2 = pnand %p847_p13, %p841_p6 }
  0x3b   : > { %851 = shalt.err (!%p848_p2)
}
  0x3c   : > { %726 = dma.hbm_to_vmem [thread:$0]  (!%p1103_p0), %s203_s10, 64, %s206_s13, %s194_s12  }
  0x3d   : > { %s865_s1 = scalar_lea.vmem %s1141_s2, 128  ;;  %s998_s19 = smov [#allocation7]  }
  0x3e   : > { %p866_p12 = scmp.ne.s32.totalorder %s1141_s2, %s865_s1  ;;  %s870_s5 = sshll.u32 %s998_s19, 4  ;;  %s871_s5 = int_to_ptr.vmem [resolvable:$false] %s870_s5 }
  0x3f   : > { %s872_s29 = scalar_lea.vmem %s871_s5, 256  ;;  %p873_p7 = scmp.lt.s32.totalorder %s1141_s2, %s871_s5 }
  0x40   : > { %p868_p4 = pnand %p866_p12, %p798_p1  ;;  %p874_p6 = scmp.lt.s32.totalorder %s872_s29, %s865_s1 }
  0x42   : > { %p869_p5 = pneg %p868_p4  ;;  %p875_p10 = por %p874_p6, %p873_p7 }
  0x44   : > { %p876_p13 = pnand %p875_p10, %p869_p5 }
  0x46   : > { %879 = shalt.err (!%p876_p13)
}
  0x47   : > { %732 = dma.hbm_to_vmem [thread:$0]  (!%p1103_p0), %s1116_s26, 128, %s1141_s2, %s1118_s25  }
  0x48   : > { %250 = sbr.rel (%p1130_p3) target bundleno = 799 (0x31f), region = 32  ;;  %s1163_s7 = sand.u32 (!%p1130_p3), 1, %s978_s16  }
  0x49   : > { %s1166_s23 = sshll.u32 (!%p1130_p3), %s1163_s7, 2  ;;  %s253_s9 = scalar_lea.sflag (!%p1130_p3), [#allocation3], %s1163_s7 }
  0x4a   : > { %s256_s24 = scalar_lea.vmem (!%p1130_p3), [#allocation2], %s1166_s23 }
  0x4d   : > { %957 = dma.done.wait (%p1079_p8), %s253_s9, 64  }
  0x4e   : > { %959 = vsyncadd (%p1079_p8), %s253_s9, 4294967232  ;;  %s261_s2 = sand.u32 1, %s1059_s21   ;;  %s686_s8 = sshll.u32 %s1163_s7, 3 }
  0x4f   : > { %s262_s26 = scalar_lea.sflag [#allocation6], %s261_s2  ;;  %s265_s25 = scalar_lea.vmem [#allocation5], %s686_s8 }
  0x50   : > { %961 = dma.done.wait (%p1079_p8), %s262_s26, 256  }
  0x51   : > { %963 = vsyncadd (%p1079_p8), %s262_s26, 4294967040  ;;  %v999_v0 = vmov 0.0   ;;  %vm1000_vm0 = vmmov 0   ;;  %vm318_vm1 = vcmask 261120   ;;  %v316_v1 = vld [vmem:[%s265_s25] sm:$0xff]  ;;  %vm395_vm2 = vcmask 60416  }
  0x52   : > { %703 = vmatprep.subr.mxu0 %v999_v0  ;;  %705 = vmatprep.mubr.msk.f32.mxu0 %vm1000_vm0, %v999_v0  ;;  %v314_v2 = vld [vmem:[%s256_s24] sm:$0xf]  ;;  %s274_s21 = scalar_lea.vmem [#allocation7], %s686_s8  ;;  %vm407_vm3 = vcmask 64512   ;;  %s313_s27 = scalar_lea.vmem [#allocation9], %s1166_s23 }
  0x53   : > { %708 = vmatprep.subr.mxu1 %v999_v0  ;;  %710 = vmatprep.mubr.msk.f32.mxu1 %vm1000_vm0, %v999_v0  ;;  %v315_v3 = vmul.f32 0.17677669, %v314_v2  ;;  %v317_v12 = vld [vmem:[%s274_s21] sm:$0xff]  ;;  %s695_s6 = sshll.u32 %s986_s18, 6  ;;  %s518_s12 = sshll.u32 %s313_s27, 4  ;;  %s519_s12 = int_to_ptr.vmem [resolvable:$true] %s518_s12 }
  0x54   : > { %704 = vmatpush3.xpose.msk.msra.mxu0 %vm318_vm1, %v316_v1  ;;  %709 = vmatpush3.msra.mxu1 %v317_v12  ;;  %s516_s13 = scalar_lea.hbm %s1261_s4, %s695_s6  ;;  %s490_s14 = scalar_lea.sflag [#allocation10], %s1163_s7 }
  0x55   : > { %s880_s22 = scalar_lea.vmem %s519_s12, 64  ;;  %s1001_s1 = smov [#allocation9]  }
  0x56   : > { %p881_p8 = scmp.ne.s32.totalorder %s519_s12, %s880_s22  ;;  %s884_s19 = sshll.u32 %s1001_s1, 4  ;;  %s885_s19 = int_to_ptr.vmem [resolvable:$false] %s884_s19 }
  0x57   : > { %706 = vmatmul.mubr.msk.f32.vlgmr.msra.gmra.mxu0 %vm318_vm1, %v315_v3  ;;  %s886_s5 = scalar_lea.vmem %s885_s19, 128  ;;  %p887_p1 = scmp.lt.s32.totalorder %s519_s12, %s885_s19 }
  0x58   : > { %p882_p12 = pnand %p881_p8, %p1083_p9  ;;  %p888_p3 = scmp.lt.s32.totalorder %s886_s5, %s880_s22 }
  0x5a   : > { %p883_p0 = pneg %p882_p12  ;;  %p889_p2 = por %p888_p3, %p887_p1 }
  0x5c   : > { %p890_p4 = pnand %p889_p2, %p883_p0 }
 0x117   : > { %v391_v4 = vpop.f32.mrf.mxu0 }
 0x118   : > { %v396_v5 = vsel %vm395_vm2, %v391_v4, -inf }
 0x119   : > { %397 = vmax.xlane.f32.xlu0 %v396_v5  ;;  %v707_v6 = vpop.f32.mrf.mxu0 }
 0x1a2   : > { %v398_v7 = vpop.xlane.xlu0 %397 }
 0x1a3   : > { %v399_v8 = vsub.f32 %v391_v4, %v398_v7 }
 0x1a5   : > { %v400_v9 = vmul.f32 1.442695, %v399_v8 }
 0x1a7   : > { %792 = vpow2.f32 %v400_v9 }
 0x1b4   : > { %v793_v10 = vpop.eup %792 }
 0x1b5   : > { %v402_v11 = vsel %vm395_vm2, %v793_v10, 0.0 }
 0x1b6   : > { %403 = vadd.xlane.f32.xlu0 %v402_v11 }
 0x23f   : > { %v404_v13 = vpop.xlane.xlu0 %403 }
 0x240   : > { %794 = vrcp.f32 %v404_v13 }
 0x24d   : > { %v795_v14 = vpop.eup %794 }
 0x24e   : > { %v406_v15 = vmul.f32 %v795_v14, %v793_v10 }
 0x250   : > { %711 = vmatmul.mubr.msk.f32.vlgmr.msra.gmra.mxu1 %vm407_vm3, %v406_v15  ;;  %483 = vst.msk [vmem:[%s313_s27] sm:$0xf] %vm395_vm2, %v406_v15 }
 0x251   : > { %893 = shalt.err (!%p890_p4)
}
 0x252   : > { %s894_s29 = scalar_lea.hbm %s516_s13, 64  ;;  %s898_s2 = scalar_lea.hbm %s1261_s4, 128 }
 0x253   : > { %p895_p5 = scmp.ne.s32.totalorder %s516_s13, %s894_s29  ;;  %p899_p10 = scmp.lt.s32.totalorder %s516_s13, %s1261_s4 }
 0x254   : > { %p900_p13 = scmp.lt.s32.totalorder %s898_s2, %s894_s29 }
 0x255   : > { %p896_p7 = pnand %p895_p5, %p1083_p9 }
 0x256   : > { %p901_p8 = por %p900_p13, %p899_p10 }
 0x257   : > { %p897_p6 = pneg %p896_p7 }
 0x259   : > { %p902_p12 = pnand %p901_p8, %p897_p6 }
 0x25b   : > { %905 = shalt.err (!%p902_p12)
}
 0x25c   : > { %720 = dma.vmem_to_hbm [thread:$0]  (%p1083_p9), %s519_s12, 64, %s516_s13, %s490_s14   ;;  %vm481_vm4 = vcmask 257024  }
 0x25d   : > { %s306_s25 = scalar_lea.vmem [#allocation8], %s1166_s23  ;;  %s1209_s11 = scalar_lea.hbm %s1260_s3, %s695_s6 }
 0x25e   : > { %s504_s21 = sshll.u32 %s306_s25, 4  ;;  %s485_s22 = scalar_lea.sflag [#allocation4], %s1163_s7  ;;  %s1211_s21 = int_to_ptr.vmem [resolvable:$true] %s504_s21 }
 0x25f   : > { %s906_s1 = scalar_lea.vmem %s1211_s21, 64  ;;  %s1002_s18 = smov [#allocation8]  }
 0x260   : > { %p907_p0 = scmp.ne.s32.totalorder %s1211_s21, %s906_s1  ;;  %s910_s23 = sshll.u32 %s1002_s18, 4  ;;  %s911_s23 = int_to_ptr.vmem [resolvable:$false] %s910_s23 }
 0x261   : > { %s912_s13 = scalar_lea.vmem %s911_s23, 128  ;;  %p913_p2 = scmp.lt.s32.totalorder %s1211_s21, %s911_s23 }
 0x262   : > { %p908_p1 = pnand %p907_p0, %p1083_p9  ;;  %p914_p4 = scmp.lt.s32.totalorder %s912_s13, %s906_s1 }
 0x264   : > { %p909_p3 = pneg %p908_p1  ;;  %p915_p5 = por %p914_p4, %p913_p2 }
 0x266   : > { %p916_p7 = pnand %p915_p5, %p909_p3 }
 0x310   : > { %v477_v16 = vpop.f32.mrf.mxu1 }
 0x311   : > { %482 = vst.msk [vmem:[%s306_s25] sm:$0xf] %vm481_vm4, %v477_v16 }
 0x312   : > { %v712_v17 = vpop.f32.mrf.mxu1 }
 0x313   : > { %919 = shalt.err (!%p916_p7)
}
 0x314   : > { %s920_s6 = scalar_lea.hbm %s1209_s11, 64  ;;  %s924_s14 = scalar_lea.hbm %s1260_s3, 128 }
 0x315   : > { %p921_p6 = scmp.ne.s32.totalorder %s1209_s11, %s920_s6  ;;  %p925_p8 = scmp.lt.s32.totalorder %s1209_s11, %s1260_s3 }
 0x316   : > { %p926_p12 = scmp.lt.s32.totalorder %s924_s14, %s920_s6 }
 0x317   : > { %p922_p10 = pnand %p921_p6, %p1083_p9 }
 0x318   : > { %p927_p0 = por %p926_p12, %p925_p8 }
 0x319   : > { %p923_p13 = pneg %p922_p10 }
 0x31b   : > { %p928_p1 = pnand %p927_p0, %p923_p13 }
 0x31d   : > { %931 = shalt.err (!%p928_p1)
}
 0x31e   : > { %719 = dma.vmem_to_hbm [thread:$0]  (%p1083_p9), %s1211_s21, 64, %s1209_s11, %s485_s22  }
 0x31f PF: > { %s530_s29 = sand.u32 1, %s974_s15   ;;  %p1277_p3 = scmp.ge.s32.totalorder %s994_s20, 2 }
 0x320   : > { %s531_s9 = scalar_lea.sflag [#allocation4], %s530_s29 }
 0x321   : > { %p734_p2 = pnand %p1277_p3, %p1090_p11 }
 0x323   : > { %p735_p4 = pneg %p734_p2 }
 0x325   : > { %965 = dma.done.wait (%p735_p4), %s531_s9, 64  }
 0x326   : > { %967 = vsyncadd (%p735_p4), %s531_s9, 4294967232  ;;  %s540_s24 = scalar_lea.sflag [#allocation10], %s530_s29 }
 0x327   : > { %969 = dma.done.wait (%p735_p4), %s540_s24, 64  }
 0x328   : > { %971 = vsyncadd (%p735_p4), %s540_s24, 4294967232  ;;  %s27_s20 = sadd.s32 1, %s994_s20   ;;  %s1278_s28 = sld [smem:[#allocation17_spill]] }
 0x329   : > { %p24_p5 = scmp.ge.s32.totalorder %s27_s20, 4   ;;  %s1279_s18 = sld [smem:[#allocation15_spill]] }
 0x32a   : > { %s1280_s19 = sld [smem:[#allocation16_spill]]  ;;  %s1281_s15 = smov %s978_s16 }
 0x32b   : > { %s1282_s16 = smov %s982_s17  ;;  %26 = sbr.rel (!%p24_p5) target bundleno = 13 (0xd), region = 118 }
 0x32e   : > { %s1283_s17 = smov %s1278_s28 }
 0x330   :  { %545 = vsyncpa [#allocation3], 1 }
 0x331   :  { %547 = vsyncpa [#allocation3 + $0x1], 1 }
 0x332   :  { %548 = vsyncpa [#allocation6], 1 }
 0x333   :  { %550 = vsyncpa [#allocation6 + $0x1], 1 }
 0x334   :  { %551 = vsyncpa [#allocation4], 1 }
 0x335   :  { %553 = vsyncpa [#allocation4 + $0x1], 1 }
 0x336   :  { %554 = vsyncpa [#allocation10], 1 }
 0x337   :  { %556 = vsyncpa [#allocation10 + $0x1], 1 }

</bundles_post_ra>
